<compile_context>
chip_gen: v6e
topology: v6e:2x2x1
jax: 0.10.0
libtpu: 0.0.40
codegen_flags: <defaults>
</compile_context>

<pallas_src>
import functools

import jax
import jax.numpy as jnp
from jax.experimental import pallas as pl
from jax.experimental.pallas import tpu as pltpu


def _attention_block_kernel(g_ref, x_ref, wg_ref, wx_ref, b_ref,
                            wpsi_ref, bpsi_ref, out_ref):
    # g_ref:   (F_g, T)        x_ref:   (F_l, T)
    # wg_ref:  (F_int, F_g)    wx_ref:  (F_int, F_l)    (activation dtype)
    # b_ref:   (F_int, 1) f32  wpsi_ref:(F_int, 1) f32  bpsi_ref: (1, 1) f32
    # out_ref: (F_l, T)
    g = g_ref[...]
    x = x_ref[...]

    # 1x1 conv (+ folded BN) == channel matmul; pixels stay lane-dense. f32 accumulation.
    h = jnp.dot(wg_ref[...], g, preferred_element_type=jnp.float32)
    h = h + jnp.dot(wx_ref[...], x, preferred_element_type=jnp.float32)
    h = jnp.maximum(h + b_ref[...], 0.0)                       # (F_int, T), f32

    # psi projection on VPU (broadcast mul) + sublane reduce (XLU) -> lane-dense (1, T).
    psi = jnp.sum(wpsi_ref[...] * h, axis=0, keepdims=True) + bpsi_ref[...]
    psi = jax.nn.sigmoid(psi)                                   # (1, T), f32

    # Gate x (broadcast psi over channel sublanes) in the activation dtype.
    out_ref[...] = (x * psi.astype(x.dtype)).astype(out_ref.dtype)


def _fold_bn(w, b, gamma, beta, mean, var, eps=1e-5):
    """Fold eval-mode BatchNorm into a 1x1 conv. w: (C_in, C_out), b: (C_out,)."""
    s = gamma / jnp.sqrt(var + eps)
    w_eff = w * s[None, :]
    b_eff = (b - mean) * s + beta
    return w_eff, b_eff


def attention_block(g, x, params, *, tile_pix=4096, matmul_dtype=None):
    """g: (N, F_g, H, W), x: (N, F_l, H, W) (NCHW, like PyTorch). Returns (N, F_l, H, W).

    matmul_dtype: optional dtype for the channel matmuls / activation DMA (e.g. jnp.bfloat16
    for f32 callers: ~3-4x MXU rate and half the activation HBM bytes, f32 accumulation).
    """
    N, F_g, H, W = g.shape
    _, F_l, _, _ = x.shape
    HW = H * W
    in_dtype = x.dtype
    mm_dtype = jnp.dtype(matmul_dtype) if matmul_dtype is not None else jnp.dtype(in_dtype)

    # Fold BN into conv weights/biases (plain-JAX glue).
    wg_eff, bg_eff = _fold_bn(params["wg"], params["bg"], *params["bn_g"])        # (F_g, F_int)
    wx_eff, bx_eff = _fold_bn(params["wx"], params["bx"], *params["bn_x"])        # (F_l, F_int)
    wp_eff, bp_eff = _fold_bn(params["wpsi"], params["bpsi"], *params["bn_psi"])  # (F_int, 1)
    F_int = wg_eff.shape[1]

    # Transposed weights for the channels-on-sublanes / pixels-on-lanes layout.
    wg_t = wg_eff.T.astype(mm_dtype)                          # (F_int, F_g)
    wx_t = wx_eff.T.astype(mm_dtype)                          # (F_int, F_l)
    b_sum = (bg_eff + bx_eff).reshape(F_int, 1).astype(jnp.float32)   # fused bias
    wp_col = wp_eff.reshape(F_int, 1).astype(jnp.float32)     # psi weights as a column (VPU path)
    bp_c = bp_eff.reshape(1, 1).astype(jnp.float32)

    # NCHW -> (N, C, H*W): pure reshape, no transpose / pad / extra HBM pass.
    g3 = g.reshape(N, F_g, HW).astype(mm_dtype)
    x3 = x.reshape(N, F_l, HW).astype(mm_dtype)

    act_isz = jnp.dtype(mm_dtype).itemsize
    out_isz = jnp.dtype(in_dtype).itemsize
    w_bytes = (wg_t.size + wx_t.size) * act_isz + (b_sum.size + wp_col.size + bp_c.size) * 4

    # Generation-aware VMEM budget (v5e/v6e: 128 MiB, v7x: 64 MiB).
    try:
        vmem_cap = int(pltpu.get_tpu_info().vmem_capacity_bytes)
    except Exception:
        vmem_cap = 64 * 1024 * 1024  # conservative fallback, safe on every generation
    vmem_budget = int(vmem_cap * 0.65)
    vmem_limit = int(vmem_cap * 0.80)

    def _tile_bytes(t):
        io = 2 * ((F_g + F_l) * act_isz + F_l * out_isz) * t        # double-buffered in/out tiles
        interm = (3 * F_int + 2) * 4 * t                             # f32 dot results, h, psi (+slack)
        return io + interm + 2 * w_bytes

    # Lane-aligned pixel tile, no larger than the (lane-rounded) pixel dim, shrunk to fit VMEM.
    tile_pix = max(128, min(int(tile_pix), pl.cdiv(HW, 128) * 128))
    tile_pix = pl.cdiv(tile_pix, 128) * 128
    while tile_pix > 128 and _tile_bytes(tile_pix) > vmem_budget:
        tile_pix -= 128

    num_pix_tiles = pl.cdiv(HW, tile_pix)   # ragged last tile handled by Pallas (OOB writes dropped)

    cost = pl.CostEstimate(
        flops=int(2 * N * HW * F_int * (F_g + F_l + 1)),
        transcendentals=int(N * HW),
        bytes_accessed=int(N * HW * ((F_g + F_l) * act_isz + F_l * out_isz) + w_bytes),
    )

    def _make_call(single_buffer_weights):
        if single_buffer_weights:
            wspec = functools.partial(pl.BlockSpec, pipeline_mode=pl.Buffered(1))
        else:
            wspec = pl.BlockSpec
        grid_spec = pltpu.PrefetchScalarGridSpec(
            num_scalar_prefetch=0,
            # Pixel-tile axis first so v7x's two TensorCores share work even when N == 1.
            grid=(num_pix_tiles, N),
            in_specs=[
                pl.BlockSpec((None, F_g, tile_pix), lambda p, b: (b, 0, p)),
                pl.BlockSpec((None, F_l, tile_pix), lambda p, b: (b, 0, p)),
                wspec((F_int, F_g), lambda p, b: (0, 0)),
                wspec((F_int, F_l), lambda p, b: (0, 0)),
                wspec((F_int, 1), lambda p, b: (0, 0)),
                wspec((F_int, 1), lambda p, b: (0, 0)),
                wspec((1, 1), lambda p, b: (0, 0)),
            ],
            out_specs=pl.BlockSpec((None, F_l, tile_pix), lambda p, b: (b, 0, p)),
        )
        return pl.pallas_call(
            _attention_block_kernel,
            out_shape=jax.ShapeDtypeStruct((N, F_l, HW), in_dtype),
            grid_spec=grid_spec,
            compiler_params=pltpu.CompilerParams(
                dimension_semantics=("parallel", "parallel"),
                vmem_limit_bytes=vmem_limit,
            ),
            cost_estimate=cost,
        )

    args = (g3, x3, wg_t, wx_t, b_sum, wp_col, bp_c)
    try:
        out3 = _make_call(True)(*args)
    except Exception:
        # pipeline_mode=pl.Buffered(1) unsupported on this jax/libtpu build: plain specs.
        out3 = _make_call(False)(*args)

    return out3.reshape(N, F_l, H, W)


def _reference(g, x, params):
    """Pure-JAX f32 reference of the same forward pass (for correctness check)."""
    wg_eff, bg_eff = _fold_bn(params["wg"], params["bg"], *params["bn_g"])
    wx_eff, bx_eff = _fold_bn(params["wx"], params["bx"], *params["bn_x"])
    wp_eff, bp_eff = _fold_bn(params["wpsi"], params["bpsi"], *params["bn_psi"])
    gf = jnp.transpose(g, (0, 2, 3, 1))
    xf = jnp.transpose(x, (0, 2, 3, 1))
    g1 = gf @ wg_eff + bg_eff
    x1 = xf @ wx_eff + bx_eff
    h = jnp.maximum(g1 + x1, 0.0)
    psi = jax.nn.sigmoid(h @ wp_eff + bp_eff)
    out = xf * psi
    return jnp.transpose(out, (0, 3, 1, 2))


def make_params(key, F_g, F_l, F_int):
    ks = jax.random.split(key, 12)

    def bn(k, c):
        k1, k2, k3 = jax.random.split(k, 3)
        gamma = 1.0 + 0.1 * jax.random.normal(k1, (c,), jnp.float32)
        beta = 0.1 * jax.random.normal(k2, (c,), jnp.float32)
        mean = 0.1 * jax.random.normal(k3, (c,), jnp.float32)
        var = jnp.ones((c,), jnp.float32) * 0.9
        return gamma, beta, mean, var

    return {
        # conv weights stored as (C_in, C_out)
        "wg": 0.2 * jax.random.normal(ks[0], (F_g, F_int), jnp.float32),
        "bg": 0.1 * jax.random.normal(ks[1], (F_int,), jnp.float32),
        "wx": 0.2 * jax.random.normal(ks[2], (F_l, F_int), jnp.float32),
        "bx": 0.1 * jax.random.normal(ks[3], (F_int,), jnp.float32),
        "wpsi": 0.2 * jax.random.normal(ks[4], (F_int, 1), jnp.float32),
        "bpsi": 0.1 * jax.random.normal(ks[5], (1,), jnp.float32),
        "bn_g": bn(ks[6], F_int),
        "bn_x": bn(ks[7], F_int),
        "bn_psi": bn(ks[8], 1),
    }


if __name__ == "__main__":
    key = jax.random.PRNGKey(0)
    k_g, k_x, k_p = jax.random.split(key, 3)

    N, F_g, F_l, F_int, H, W = 2, 4, 4, 8, 16, 16
    g = jax.random.normal(k_g, (N, F_g, H, W), jnp.float32)
    x = jax.random.normal(k_x, (N, F_l, H, W), jnp.float32)
    params = make_params(k_p, F_g, F_l, F_int)

    ref = _reference(g, x, params)

    # Default path: matmuls in the input dtype (f32 here) -> tight tolerance.
    out = jax.block_until_ready(attention_block(g, x, params))
    assert out.shape == x.shape
    assert jnp.allclose(out, ref, atol=2e-5, rtol=2e-5), "f32 path mismatch vs JAX reference"

    # Optional bf16-matmul path (what large f32 callers should use); looser tolerance.
    out_bf16 = jax.block_until_ready(
        attention_block(g, x, params, matmul_dtype=jnp.bfloat16))
    assert out_bf16.shape == x.shape
    assert jnp.allclose(out_bf16, ref, atol=6e-2, rtol=6e-2), "bf16 path mismatch vs JAX reference"

    print("KERNEL_OK")
</pallas_src>

<mosaic_0001>
module attributes {stable_mosaic.version = 11 : i64} {
  func.func @_attention_block_kernel(%arg0: i32, %arg1: i32, %arg2: memref<1x4x256xf32, #tpu.memory_space<vmem>>, %arg3: memref<1x4x256xf32, #tpu.memory_space<vmem>>, %arg4: memref<8x4xf32, #tpu.memory_space<vmem>>, %arg5: memref<8x4xf32, #tpu.memory_space<vmem>>, %arg6: memref<8x1xf32, #tpu.memory_space<vmem>>, %arg7: memref<8x1xf32, #tpu.memory_space<vmem>>, %arg8: memref<1x1xf32, #tpu.memory_space<vmem>>, %arg9: memref<1x4x256xf32, #tpu.memory_space<vmem>>) attributes {dimension_semantics = [#tpu.dimension_semantics<parallel>, #tpu.dimension_semantics<parallel>], iteration_bounds = array<i64: 1, 2>, scalar_prefetch = 0 : i64, scratch_operands = 0 : i64, tpu.core_type = #tpu.core_type<tc>, window_params = [{transform_indices = @transform_0, window_bounds = array<i64: 1, 4, 256>}, {transform_indices = @transform_1, window_bounds = array<i64: 1, 4, 256>}, {pipeline_mode = #tpu.pipeline_mode<synchronous>, transform_indices = @transform_2, window_bounds = array<i64: 8, 4>}, {pipeline_mode = #tpu.pipeline_mode<synchronous>, transform_indices = @transform_3, window_bounds = array<i64: 8, 4>}, {pipeline_mode = #tpu.pipeline_mode<synchronous>, transform_indices = @transform_4, window_bounds = array<i64: 8, 1>}, {pipeline_mode = #tpu.pipeline_mode<synchronous>, transform_indices = @transform_5, window_bounds = array<i64: 8, 1>}, {pipeline_mode = #tpu.pipeline_mode<synchronous>, transform_indices = @transform_6, window_bounds = array<i64: 1, 1>}, {transform_indices = @transform_7, window_bounds = array<i64: 1, 4, 256>}]} {
    %c0 = arith.constant 0 : index
    %c0_0 = arith.constant 0 : index
    %c0_1 = arith.constant 0 : index
    %0 = vector.load %arg2[%c0, %c0_0, %c0_1] : memref<1x4x256xf32, #tpu.memory_space<vmem>>, vector<1x4x256xf32>
    %1 = vector.shape_cast %0 : vector<1x4x256xf32> to vector<4x256xf32>
    %c0_2 = arith.constant 0 : index
    %c0_3 = arith.constant 0 : index
    %c0_4 = arith.constant 0 : index
    %2 = vector.load %arg3[%c0_2, %c0_3, %c0_4] : memref<1x4x256xf32, #tpu.memory_space<vmem>>, vector<1x4x256xf32>
    %3 = vector.shape_cast %2 : vector<1x4x256xf32> to vector<4x256xf32>
    %c0_5 = arith.constant 0 : index
    %c0_6 = arith.constant 0 : index
    %4 = vector.load %arg4[%c0_5, %c0_6] : memref<8x4xf32, #tpu.memory_space<vmem>>, vector<8x4xf32>
    %cst = arith.constant dense<0.000000e+00> : vector<8x256xf32>
    %5 = tpu.matmul %4, %1, %cst {dimension_numbers = #tpu.dot_dimension_numbers<[1], [0], [0], [1], [0, 0, 1, 1], [], []>} : vector<8x4xf32>, vector<4x256xf32>, vector<8x256xf32> -> vector<8x256xf32>
    %c0_7 = arith.constant 0 : index
    %c0_8 = arith.constant 0 : index
    %6 = vector.load %arg5[%c0_7, %c0_8] : memref<8x4xf32, #tpu.memory_space<vmem>>, vector<8x4xf32>
    %cst_9 = arith.constant dense<0.000000e+00> : vector<8x256xf32>
    %7 = tpu.matmul %6, %3, %cst_9 {dimension_numbers = #tpu.dot_dimension_numbers<[1], [0], [0], [1], [0, 0, 1, 1], [], []>} : vector<8x4xf32>, vector<4x256xf32>, vector<8x256xf32> -> vector<8x256xf32>
    %8 = arith.addf %5, %7 : vector<8x256xf32>
    %c0_10 = arith.constant 0 : index
    %c0_11 = arith.constant 0 : index
    %9 = vector.load %arg6[%c0_10, %c0_11] : memref<8x1xf32, #tpu.memory_space<vmem>>, vector<8x1xf32>
    %10 = vector.broadcast %9 : vector<8x1xf32> to vector<8x256xf32>
    %11 = arith.addf %8, %10 : vector<8x256xf32>
    %cst_12 = arith.constant 0.000000e+00 : f32
    %12 = vector.broadcast %cst_12 : f32 to vector<8x256xf32>
    %13 = arith.maximumf %11, %12 : vector<8x256xf32>
    %c0_13 = arith.constant 0 : index
    %c0_14 = arith.constant 0 : index
    %14 = vector.load %arg7[%c0_13, %c0_14] : memref<8x1xf32, #tpu.memory_space<vmem>>, vector<8x1xf32>
    %15 = vector.broadcast %14 : vector<8x1xf32> to vector<8x256xf32>
    %16 = arith.mulf %15, %13 : vector<8x256xf32>
    %cst_15 = arith.constant dense<0.000000e+00> : vector<256xf32>
    %17 = vector.multi_reduction <add>, %16, %cst_15 [0] : vector<8x256xf32> to vector<256xf32>
    %18 = vector.shape_cast %17 : vector<256xf32> to vector<1x256xf32>
    %c0_16 = arith.constant 0 : index
    %c0_17 = arith.constant 0 : index
    %19 = vector.load %arg8[%c0_16, %c0_17] : memref<1x1xf32, #tpu.memory_space<vmem>>, vector<1x1xf32>
    %20 = vector.broadcast %19 : vector<1x1xf32> to vector<1x256xf32>
    %21 = arith.addf %18, %20 : vector<1x256xf32>
    %22 = arith.negf %21 : vector<1x256xf32>
    %23 = math.exp %22 : vector<1x256xf32>
    %cst_18 = arith.constant 1.000000e+00 : f32
    %24 = vector.broadcast %cst_18 : f32 to vector<1x256xf32>
    %25 = arith.addf %24, %23 : vector<1x256xf32>
    %26 = arith.divf %24, %25 : vector<1x256xf32>
    %27 = vector.broadcast %26 : vector<1x256xf32> to vector<4x256xf32>
    %28 = arith.mulf %3, %27 : vector<4x256xf32>
    %c0_19 = arith.constant 0 : index
    %c0_20 = arith.constant 0 : index
    %c0_21 = arith.constant 0 : index
    %29 = vector.load %arg9[%c0_19, %c0_20, %c0_21] : memref<1x4x256xf32, #tpu.memory_space<vmem>>, vector<1x4x256xf32>
    %30 = vector.shape_cast %29 : vector<1x4x256xf32> to vector<4x256xf32>
    %31 = vector.shape_cast %28 : vector<4x256xf32> to vector<1x4x256xf32>
    tpu.vector_store %arg9[%c0_19, %c0_20, %c0_21], %31 {strides = array<i32>} : memref<1x4x256xf32, #tpu.memory_space<vmem>>, vector<1x4x256xf32>,
    return
  }
  func.func @transform_0(%arg0: i32, %arg1: i32) -> (i32, i32, i32) {
    %c0_i32 = arith.constant 0 : i32
    %c0_i32_0 = arith.constant 0 : i32
    return %arg1, %c0_i32, %arg0 : i32, i32, i32
  }
  func.func @transform_1(%arg0: i32, %arg1: i32) -> (i32, i32, i32) {
    %c0_i32 = arith.constant 0 : i32
    %c0_i32_0 = arith.constant 0 : i32
    return %arg1, %c0_i32, %arg0 : i32, i32, i32
  }
  func.func @transform_2(%arg0: i32, %arg1: i32) -> (i32, i32) {
    %c0_i32 = arith.constant 0 : i32
    %c0_i32_0 = arith.constant 0 : i32
    %c0_i32_1 = arith.constant 0 : i32
    return %c0_i32, %c0_i32_0 : i32, i32
  }
  func.func @transform_3(%arg0: i32, %arg1: i32) -> (i32, i32) {
    %c0_i32 = arith.constant 0 : i32
    %c0_i32_0 = arith.constant 0 : i32
    %c0_i32_1 = arith.constant 0 : i32
    return %c0_i32, %c0_i32_0 : i32, i32
  }
  func.func @transform_4(%arg0: i32, %arg1: i32) -> (i32, i32) {
    %c0_i32 = arith.constant 0 : i32
    %c0_i32_0 = arith.constant 0 : i32
    %c0_i32_1 = arith.constant 0 : i32
    return %c0_i32, %c0_i32_0 : i32, i32
  }
  func.func @transform_5(%arg0: i32, %arg1: i32) -> (i32, i32) {
    %c0_i32 = arith.constant 0 : i32
    %c0_i32_0 = arith.constant 0 : i32
    %c0_i32_1 = arith.constant 0 : i32
    return %c0_i32, %c0_i32_0 : i32, i32
  }
  func.func @transform_6(%arg0: i32, %arg1: i32) -> (i32, i32) {
    %c0_i32 = arith.constant 0 : i32
    %c0_i32_0 = arith.constant 0 : i32
    %c0_i32_1 = arith.constant 0 : i32
    return %c0_i32, %c0_i32_0 : i32, i32
  }
  func.func @transform_7(%arg0: i32, %arg1: i32) -> (i32, i32, i32) {
    %c0_i32 = arith.constant 0 : i32
    %c0_i32_0 = arith.constant 0 : i32
    return %arg1, %c0_i32, %arg0 : i32, i32, i32
  }
}

module attributes {stable_mosaic.version = 11 : i64} {
  func.func @_attention_block_kernel(%arg0: i32, %arg1: i32, %arg2: memref<1x4x256xf32, #tpu.memory_space<vmem>>, %arg3: memref<1x4x256xf32, #tpu.memory_space<vmem>>, %arg4: memref<8x4xf32, #tpu.memory_space<vmem>>, %arg5: memref<8x4xf32, #tpu.memory_space<vmem>>, %arg6: memref<8x1xf32, #tpu.memory_space<vmem>>, %arg7: memref<8x1xf32, #tpu.memory_space<vmem>>, %arg8: memref<1x1xf32, #tpu.memory_space<vmem>>, %arg9: memref<1x4x256xf32, #tpu.memory_space<vmem>>) attributes {dimension_semantics = [#tpu.dimension_semantics<parallel>, #tpu.dimension_semantics<parallel>], iteration_bounds = array<i64: 1, 2>, scalar_prefetch = 0 : i64, scratch_operands = 0 : i64, tpu.core_type = #tpu.core_type<tc>, window_params = [{transform_indices = @transform_0, window_bounds = array<i64: 1, 4, 256>}, {transform_indices = @transform_1, window_bounds = array<i64: 1, 4, 256>}, {pipeline_mode = #tpu.pipeline_mode<synchronous>, transform_indices = @transform_2, window_bounds = array<i64: 8, 4>}, {pipeline_mode = #tpu.pipeline_mode<synchronous>, transform_indices = @transform_3, window_bounds = array<i64: 8, 4>}, {pipeline_mode = #tpu.pipeline_mode<synchronous>, transform_indices = @transform_4, window_bounds = array<i64: 8, 1>}, {pipeline_mode = #tpu.pipeline_mode<synchronous>, transform_indices = @transform_5, window_bounds = array<i64: 8, 1>}, {pipeline_mode = #tpu.pipeline_mode<synchronous>, transform_indices = @transform_6, window_bounds = array<i64: 1, 1>}, {transform_indices = @transform_7, window_bounds = array<i64: 1, 4, 256>}]} {
    %c0 = arith.constant 0 : index
    %c0_0 = arith.constant 0 : index
    %c0_1 = arith.constant 0 : index
    %0 = vector.load %arg2[%c0, %c0_0, %c0_1] : memref<1x4x256xf32, #tpu.memory_space<vmem>>, vector<1x4x256xf32>
    %1 = vector.shape_cast %0 : vector<1x4x256xf32> to vector<4x256xf32>
    %c0_2 = arith.constant 0 : index
    %c0_3 = arith.constant 0 : index
    %c0_4 = arith.constant 0 : index
    %2 = vector.load %arg3[%c0_2, %c0_3, %c0_4] : memref<1x4x256xf32, #tpu.memory_space<vmem>>, vector<1x4x256xf32>
    %3 = vector.shape_cast %2 : vector<1x4x256xf32> to vector<4x256xf32>
    %c0_5 = arith.constant 0 : index
    %c0_6 = arith.constant 0 : index
    %4 = vector.load %arg4[%c0_5, %c0_6] : memref<8x4xf32, #tpu.memory_space<vmem>>, vector<8x4xf32>
    %cst = arith.constant dense<0.000000e+00> : vector<8x256xf32>
    %5 = tpu.matmul %4, %1, %cst {dimension_numbers = #tpu.dot_dimension_numbers<[1], [0], [0], [1], [0, 0, 1, 1], [], []>} : vector<8x4xf32>, vector<4x256xf32>, vector<8x256xf32> -> vector<8x256xf32>
    %c0_7 = arith.constant 0 : index
    %c0_8 = arith.constant 0 : index
    %6 = vector.load %arg5[%c0_7, %c0_8] : memref<8x4xf32, #tpu.memory_space<vmem>>, vector<8x4xf32>
    %cst_9 = arith.constant dense<0.000000e+00> : vector<8x256xf32>
    %7 = tpu.matmul %6, %3, %cst_9 {dimension_numbers = #tpu.dot_dimension_numbers<[1], [0], [0], [1], [0, 0, 1, 1], [], []>} : vector<8x4xf32>, vector<4x256xf32>, vector<8x256xf32> -> vector<8x256xf32>
    %8 = arith.addf %5, %7 : vector<8x256xf32>
    %c0_10 = arith.constant 0 : index
    %c0_11 = arith.constant 0 : index
    %9 = vector.load %arg6[%c0_10, %c0_11] : memref<8x1xf32, #tpu.memory_space<vmem>>, vector<8x1xf32>
    %10 = vector.broadcast %9 : vector<8x1xf32> to vector<8x256xf32>
    %11 = arith.addf %8, %10 : vector<8x256xf32>
    %cst_12 = arith.constant 0.000000e+00 : f32
    %12 = vector.broadcast %cst_12 : f32 to vector<8x256xf32>
    %13 = arith.maximumf %11, %12 : vector<8x256xf32>
    %c0_13 = arith.constant 0 : index
    %c0_14 = arith.constant 0 : index
    %14 = vector.load %arg7[%c0_13, %c0_14] : memref<8x1xf32, #tpu.memory_space<vmem>>, vector<8x1xf32>
    %15 = vector.broadcast %14 : vector<8x1xf32> to vector<8x256xf32>
    %16 = arith.mulf %15, %13 : vector<8x256xf32>
    %cst_15 = arith.constant dense<0.000000e+00> : vector<256xf32>
    %17 = vector.multi_reduction <add>, %16, %cst_15 [0] : vector<8x256xf32> to vector<256xf32>
    %18 = vector.shape_cast %17 : vector<256xf32> to vector<1x256xf32>
    %c0_16 = arith.constant 0 : index
    %c0_17 = arith.constant 0 : index
    %19 = vector.load %arg8[%c0_16, %c0_17] : memref<1x1xf32, #tpu.memory_space<vmem>>, vector<1x1xf32>
    %20 = vector.broadcast %19 : vector<1x1xf32> to vector<1x256xf32>
    %21 = arith.addf %18, %20 : vector<1x256xf32>
    %22 = arith.negf %21 : vector<1x256xf32>
    %23 = math.exp %22 : vector<1x256xf32>
    %cst_18 = arith.constant 1.000000e+00 : f32
    %24 = vector.broadcast %cst_18 : f32 to vector<1x256xf32>
    %25 = arith.addf %24, %23 : vector<1x256xf32>
    %26 = arith.divf %24, %25 : vector<1x256xf32>
    %27 = vector.broadcast %26 : vector<1x256xf32> to vector<4x256xf32>
    %28 = arith.mulf %3, %27 : vector<4x256xf32>
    %c0_19 = arith.constant 0 : index
    %c0_20 = arith.constant 0 : index
    %c0_21 = arith.constant 0 : index
    %29 = vector.load %arg9[%c0_19, %c0_20, %c0_21] : memref<1x4x256xf32, #tpu.memory_space<vmem>>, vector<1x4x256xf32>
    %30 = vector.shape_cast %29 : vector<1x4x256xf32> to vector<4x256xf32>
    %31 = vector.shape_cast %28 : vector<4x256xf32> to vector<1x4x256xf32>
    tpu.vector_store %arg9[%c0_19, %c0_20, %c0_21], %31 {strides = array<i32>} : memref<1x4x256xf32, #tpu.memory_space<vmem>>, vector<1x4x256xf32>,
    return
  }
  func.func @transform_0(%arg0: i32, %arg1: i32) -> (i32, i32, i32) {
    %c0_i32 = arith.constant 0 : i32
    %c0_i32_0 = arith.constant 0 : i32
    return %arg1, %c0_i32, %arg0 : i32, i32, i32
  }
  func.func @transform_1(%arg0: i32, %arg1: i32) -> (i32, i32, i32) {
    %c0_i32 = arith.constant 0 : i32
    %c0_i32_0 = arith.constant 0 : i32
    return %arg1, %c0_i32, %arg0 : i32, i32, i32
  }
  func.func @transform_2(%arg0: i32, %arg1: i32) -> (i32, i32) {
    %c0_i32 = arith.constant 0 : i32
    %c0_i32_0 = arith.constant 0 : i32
    %c0_i32_1 = arith.constant 0 : i32
    return %c0_i32, %c0_i32_0 : i32, i32
  }
  func.func @transform_3(%arg0: i32, %arg1: i32) -> (i32, i32) {
    %c0_i32 = arith.constant 0 : i32
    %c0_i32_0 = arith.constant 0 : i32
    %c0_i32_1 = arith.constant 0 : i32
    return %c0_i32, %c0_i32_0 : i32, i32
  }
  func.func @transform_4(%arg0: i32, %arg1: i32) -> (i32, i32) {
    %c0_i32 = arith.constant 0 : i32
    %c0_i32_0 = arith.constant 0 : i32
    %c0_i32_1 = arith.constant 0 : i32
    return %c0_i32, %c0_i32_0 : i32, i32
  }
  func.func @transform_5(%arg0: i32, %arg1: i32) -> (i32, i32) {
    %c0_i32 = arith.constant 0 : i32
    %c0_i32_0 = arith.constant 0 : i32
    %c0_i32_1 = arith.constant 0 : i32
    return %c0_i32, %c0_i32_0 : i32, i32
  }
  func.func @transform_6(%arg0: i32, %arg1: i32) -> (i32, i32) {
    %c0_i32 = arith.constant 0 : i32
    %c0_i32_0 = arith.constant 0 : i32
    %c0_i32_1 = arith.constant 0 : i32
    return %c0_i32, %c0_i32_0 : i32, i32
  }
  func.func @transform_7(%arg0: i32, %arg1: i32) -> (i32, i32, i32) {
    %c0_i32 = arith.constant 0 : i32
    %c0_i32_0 = arith.constant 0 : i32
    return %arg1, %c0_i32, %arg0 : i32, i32, i32
  }
}

</mosaic_0001>

<bundles_post_ra>
// kernel: tpu_custom_call.1
= control target key start
LH: loop header
LB: loop body
LE: loop exit
PB: predicated region body
PF: predicated region fallthrough
CT: control target
= control target key end

     0   :  { %s1022_s0 = inlined_call_operand.vmem [shape: f32[2,4,256], index: 0, kind: input, shape index: {}]   ;;  %s1023_s1 = inlined_call_operand.vmem [shape: f32[2,4,256], index: 1, kind: input, shape index: {}]   ;;  %s1024_s2 = inlined_call_operand.vmem [shape: f32[8,4], index: 2, kind: input, shape index: {}]   ;;  %s1025_s3 = inlined_call_operand.vmem [shape: f32[8,4], index: 3, kind: input, shape index: {}]   ;;  %s1026_s4 = inlined_call_operand.vmem [shape: f32[8,1], index: 4, kind: input, shape index: {}]   ;;  %s1027_s5 = inlined_call_operand.vmem [shape: f32[8,1], index: 5, kind: input, shape index: {}]   ;;  %s1028_s6 = inlined_call_operand.<no memory space> [shape: f32[1,1], index: 6, kind: input, shape index: {}]   ;;  %s1029_s7 = inlined_call_operand.hbm [shape: f32[2,4,256], index: 7, kind: output, shape index: {}]  }
   0x1   :  { %v12_v0 = vstv %s1028_s6 }
   0x2   :  { %13 = vst [vmem:[#allocation2] sm:$0x1] %v12_v0 }
   0x3   :  { %14 = vsyncpa [#allocation4], 0 }
   0x4   :  { %16 = vsyncpa [#allocation4 + $0x1], 0  ;;  %s902_s26 = smov 0   ;;  %s904_s27 = smov 0  }
   0x5   :  { %s906_s28 = smov 0   ;;  %s908_s29 = smov 0  }
   0x6   :  { %s910_s30 = smov 0   ;;  %s912_s8 = smov 0  }
   0x7 LB: > { %s683_s6 = sadd.s32 4294967295, %s854_s8   ;;  %s684_s9 = sadd.s32 4294967294, %s854_s8   ;;  %s854_s8 = sphi %s912_s8, %s22_s8   ;;  %s850_s30 = sphi %s910_s30, %s1036_s30   ;;  %s846_s29 = sphi %s908_s29, %s1035_s29   ;;  %s842_s28 = sphi %s906_s28, %s1034_s28   ;;  %s838_s27 = sphi %s904_s27, %s1033_s27   ;;  %s834_s26 = sphi %s902_s26, %s1032_s26  }
   0x8   : > { %s31_s10 = sadd.s32 1, %s850_s30  ;;  %s204_s11 = sadd.s32 1, %s842_s28 }
   0x9   : > { %p32_p0 = scmp.ge.s32.totalorder %s31_s10, 2  ;;  %p214_p1 = scmp.ne.s32.totalorder %s842_s28, %s838_s27 }
   0xa   : > { %p215_p2 = scmp.eq.s32.totalorder %s683_s6, 1  ;;  %p220_p3 = scmp.ne.s32.totalorder %s838_s27, %s834_s26 }
   0xb   : > { %s1038_s10 = smov (%p32_p0, %s31_s10), 0  ;;  %p221_p5 = scmp.eq.s32.totalorder %s684_s9, 1 }
   0xc   : > { %p942_p4 = por %p215_p2, %p214_p1  ;;  %s199_s13 = ssub.s32 %s850_s30, %s1038_s10 }
   0xd   : > { %p687_p6 = scmp.ge.s32.totalorder %s854_s8, 1  ;;  %p202_p7 = scmp.eq.s32.totalorder %s199_s13, 0 }
   0xe   : > { %p949_p8 = por %p221_p5, %p220_p3  ;;  %p280_p9 = scmp.lt.s32.totalorder %s854_s8, 3 }
   0xf   : > { %s955_s15 = scalar_select %p202_p7, %s842_s28, %s204_s11  }
  0x10   : > { %p281_p10 = pnand %p687_p6, %p280_p9 }
  0x11   : > { %p326_p11 = scmp.lt.s32.totalorder (!%p281_p10), %s846_s29, 1  ;;  %s708_s20 = sshll.u32 (!%p281_p10), %s846_s29, 7 }
  0x12   : > { %284 = sbr.rel (%p281_p10) target bundleno = 299 (0x12b), region = 48  ;;  %s587_s25 = scalar_lea.hbm (!%p281_p10), %s1029_s7, %s708_s20 }
  0x13   : > { %s858_s11 = smov (!%p281_p10), [#allocation3]  }
  0x14   : > { %s782_s13 = sshll.u32 (!%p281_p10), %s858_s11, 4  ;;  %s783_s13 = int_to_ptr.vmem [resolvable:$false] %s782_s13 }
  0x17   : > { %v856_v1 = vmov 0.0   ;;  %v512_v2 = vld [vmem:[%s1026_s4] sm:$0xff]  ;;  %s327_s18 = scalar_select %p326_p11, %s846_s29, 1  ;;  %v857_v4 = vmov 0   ;;  %vm356_vm0 = vcmask 1043456   ;;  %vm352_vm1 = vcmask 31744  }
  0x18   : > { %425 = vmatprep.mubr.f32.mxu0 %v856_v1  ;;  %505 = vmatprep.mubr.f32.mxu1 %v856_v1  ;;  %v542_v3 = vld [vmem:[#allocation2] sm:$0x1]  ;;  %v548_v22 = vlaneseq  ;;  %s784_s29 = scalar_lea.vmem %s783_s13, 256 }
  0x19   : > { %766 = vset.pattern.permute.xlu0 %v857_v4  ;;  %767 = vset.pattern.permute.xlu1 %v857_v4  ;;  %s706_s19 = sshll.u32 %s327_s18, 3  ;;  %v522_v5 = vld [vmem:[%s1027_s5] sm:$0xff]  ;;  %s322_s18 = sand.u32 1, %s838_s27  }
  0x1a   : > { %515 = vperm.xlu0 %766, %v512_v2   ;;  %545 = vperm.xlu1 %767, %v542_v3   ;;  %s343_s24 = scalar_lea.vmem %s1023_s1, %s706_s19  ;;  %s333_s9 = scalar_lea.vmem %s1022_s0, %s706_s19  ;;  %v349_v10 = vld [vmem:[%s1025_s3] sm:$0xff]  ;;  %v549_v28 = vshrl.u32 %v548_v22, 7 }
  0x1b   : > { %v971_v6 = vld [vmem:[%s343_s24] sm:$0xff]  ;;  %s688_s19 = sshll.u32 %s322_s18, 3  ;;  %s573_s6 = scalar_lea.sflag [#allocation4], %s322_s18 }
  0x1c   : > { %v346_v7 = vld [vmem:[%s333_s9] sm:$0xff]  ;;  %v351_v8 = vcombine.high %v971_v6, %v971_v6  ;;  %v550_v33 = vsub.s32 0, %v549_v28  ;;  %s324_s21 = scalar_lea.vmem [#allocation3], %s688_s19 }
  0x1d   : > { %v433_v9 = vcombine.high %v346_v7, %v346_v7  ;;  %v348_v11 = vld [vmem:[%s1024_s2] sm:$0xff]  ;;  %s589_s22 = sshll.u32 %s324_s21, 4  ;;  %s590_s22 = int_to_ptr.vmem [resolvable:$true] %s589_s22 }
  0x1e   : > { %525 = vperm.xlu0 %766, %v522_v5   ;;  %693 = vmatprep.subr.msk.mxu0 %vm356_vm0, %v351_v8  ;;  %s778_s9 = scalar_lea.vmem %s590_s22, 128  ;;  %p785_p1 = scmp.lt.s32.totalorder %s590_s22, %s783_s13 }
  0x1f   : > { %696 = vmatprep.subr.msk.mxu1 %vm356_vm0, %v433_v9  ;;  %694 = vmatpush1.msk.msra.mxu0 %vm356_vm0, %v971_v6  ;;  %p779_p12 = scmp.ne.s32.totalorder %s590_s22, %s778_s9  ;;  %p786_p2 = scmp.lt.s32.totalorder %s784_s29, %s778_s9 }
  0x20   : > { %697 = vmatpush1.msk.msra.mxu1 %vm356_vm0, %v346_v7  ;;  %695 = vmatmul.mubr.msk.f32.vlgmr.msra.gmra.mxu0 %vm352_vm1, %v349_v10 }
  0x21   : > { %698 = vmatmul.mubr.msk.f32.vlgmr.msra.gmra.mxu1 %vm352_vm1, %v348_v11  ;;  %p780_p13 = pnand %p779_p12, %p942_p4  ;;  %p787_p3 = por %p786_p2, %p785_p1 }
  0x23   : > { %p781_p0 = pneg %p780_p13 }
  0x25   : > { %p788_p5 = pnand %p787_p3, %p781_p0 }
  0x95   : > { %v516_v12 = vpop.permute.xlu0 %515  ;;  %v546_v34 = vpop.permute.xlu1 %545 }
  0x96   : > { %v551_v39 = vrot.slane %v546_v34, %v550_v33 }
  0x99   : > { %v526_v23 = vpop.permute.xlu0 %525 }
  0xe0   : > { %v427_v13 = vpop.f32.mrf.mxu0 }
  0xe1   : > { %v507_v14 = vpop.f32.mrf.mxu1 }
  0xe2   : > { %v508_v15 = vadd.f32 %v507_v14, %v427_v13  ;;  %v429_v16 = vpop.f32.mrf.mxu0 }
  0xe3   : > { %v509_v17 = vpop.f32.mrf.mxu1 }
  0xe4   : > { %v518_v18 = vadd.f32 %v516_v12, %v508_v15  ;;  %v510_v19 = vadd.f32 %v509_v17, %v429_v16 }
  0xe6   : > { %v519_v20 = vadd.f32 %v516_v12, %v510_v19  ;;  %v520_v21 = vmax.f32 %v518_v18, 0.0 }
  0xe8   : > { %v521_v24 = vmax.f32 %v519_v20, 0.0  ;;  %v528_v25 = vmul.f32 %v526_v23, %v520_v21 }
  0xea   : > { %v529_v26 = vmul.f32 %v526_v23, %v521_v24  ;;  %v530_v27 = vrot.slane %v528_v25, 4 }
  0xec   : > { %v531_v29 = vadd.f32 %v530_v27, %v528_v25  ;;  %v536_v30 = vrot.slane %v529_v26, 4 }
  0xee   : > { %v532_v31 = vrot.slane %v531_v29, 2  ;;  %v537_v32 = vadd.f32 %v536_v30, %v529_v26 }
  0xf0   : > { %v533_v35 = vadd.f32 %v532_v31, %v531_v29  ;;  %v538_v36 = vrot.slane %v537_v32, 2 }
  0xf2   : > { %v539_v37 = vadd.f32 %v538_v36, %v537_v32  ;;  %v534_v38 = vrot.slane %v533_v35, 1 }
  0xf4   : > { %v535_v40 = vadd.f32 %v534_v38, %v533_v35  ;;  %v540_v41 = vrot.slane %v539_v37, 1 }
  0xf6   : > { %v541_v42 = vadd.f32 %v540_v41, %v539_v37  ;;  %v552_v43 = vadd.f32 %v551_v39, %v535_v40 }
  0xf8   : > { %v553_v44 = vadd.f32 %v551_v39, %v541_v42  ;;  %v699_v45 = vmul.f32 -1.442695, %v552_v43 }
  0xfa   : > { %770 = vpow2.f32 %v699_v45  ;;  %v700_v46 = vmul.f32 -1.442695, %v553_v44 }
  0xfc   : > { %772 = vpow2.f32 %v700_v46 }
 0x107   : > { %v771_v47 = vpop.eup %770 }
 0x108   : > { %v560_v48 = vadd.f32 1.0, %v771_v47 }
 0x109   : > { %v773_v49 = vpop.eup %772 }
 0x10a   : > { %v561_v50 = vadd.f32 1.0, %v773_v49  ;;  %774 = vrcp.f32 %v560_v48 }
 0x10c   : > { %776 = vrcp.f32 %v561_v50 }
 0x117   : > { %v775_v51 = vpop.eup %774 }
 0x119   : > { %v777_v52 = vpop.eup %776 }
 0x11a   : > { %v568_v53 = vcombine.low %v775_v51, %v777_v52 }
 0x11c   : > { %v570_v54 = vmul.f32 %v568_v53, %v971_v6 }
 0x11e   : > { %571 = vst [vmem:[%s324_s21] sm:$0xff] %v570_v54 }
 0x11f   : > { %791 = shalt.err (!%p788_p5)
}
 0x120   : > { %s792_s16 = scalar_lea.hbm %s587_s25, 128  ;;  %s796_s19 = scalar_lea.hbm %s1029_s7, 256 }
 0x121   : > { %p793_p6 = scmp.ne.s32.totalorder %s587_s25, %s792_s16  ;;  %p797_p10 = scmp.lt.s32.totalorder %s587_s25, %s1029_s7 }
 0x122   : > { %p798_p11 = scmp.lt.s32.totalorder %s796_s19, %s792_s16 }
 0x123   : > { %p794_p7 = pnand %p793_p6, %p942_p4 }
 0x124   : > { %p799_p12 = por %p798_p11, %p797_p10 }
 0x125   : > { %p795_p9 = pneg %p794_p7 }
 0x127   : > { %p800_p13 = pnand %p799_p12, %p795_p9 }
 0x129   : > { %803 = shalt.err (!%p800_p13)
}
 0x12a   : > { %709 = dma.vmem_to_hbm [thread:$0]  (%p942_p4), %s590_s22, 128, %s587_s25, %s573_s6  }
 0x12b PF: > { %p715_p0 = scmp.ge.s32.totalorder %s854_s8, 2  ;;  %s601_s23 = sand.u32 1, %s834_s26  }
 0x12c   : > { %s602_s24 = scalar_lea.sflag [#allocation4], %s601_s23 }
 0x12d   : > { %p712_p1 = pnand %p715_p0, %p949_p8 }
 0x12f   : > { %p713_p2 = pneg %p712_p1 }
 0x131   : > { %829 = dma.done.wait (%p713_p2), %s602_s24, 128  }
 0x132   : > { %831 = vsyncadd (%p713_p2), %s602_s24, 4294967168  ;;  %s22_s8 = sadd.s32 1, %s854_s8   ;;  %s1032_s26 = smov %s838_s27 }
 0x133   : > { %p19_p3 = scmp.ge.s32.totalorder %s22_s8, 4   ;;  %s1033_s27 = smov %s842_s28 }
 0x134   : > { %s1034_s28 = smov %s955_s15  ;;  %s1035_s29 = smov %s850_s30 }
 0x135   : > { %s1036_s30 = smov %s1038_s10  ;;  %21 = sbr.rel (!%p19_p3) target bundleno = 7 (0x7), region = 86 }
 0x13a   :  { %607 = vsyncpa [#allocation4], 1 }
 0x13b   :  { %609 = vsyncpa [#allocation4 + $0x1], 1 }

// kernel: tpu_custom_call.1
= control target key start
LH: loop header
LB: loop body
LE: loop exit
PB: predicated region body
PF: predicated region fallthrough
CT: control target
= control target key end

     0   :  { %s1022_s0 = inlined_call_operand.vmem [shape: f32[2,4,256], index: 0, kind: input, shape index: {}]   ;;  %s1023_s1 = inlined_call_operand.vmem [shape: f32[2,4,256], index: 1, kind: input, shape index: {}]   ;;  %s1024_s2 = inlined_call_operand.vmem [shape: f32[8,4], index: 2, kind: input, shape index: {}]   ;;  %s1025_s3 = inlined_call_operand.vmem [shape: f32[8,4], index: 3, kind: input, shape index: {}]   ;;  %s1026_s4 = inlined_call_operand.vmem [shape: f32[8,1], index: 4, kind: input, shape index: {}]   ;;  %s1027_s5 = inlined_call_operand.vmem [shape: f32[8,1], index: 5, kind: input, shape index: {}]   ;;  %s1028_s6 = inlined_call_operand.<no memory space> [shape: f32[1,1], index: 6, kind: input, shape index: {}]   ;;  %s1029_s7 = inlined_call_operand.hbm [shape: f32[2,4,256], index: 7, kind: output, shape index: {}]  }
   0x1   :  { %v12_v0 = vstv %s1028_s6 }
   0x2   :  { %13 = vst [vmem:[#allocation2] sm:$0x1] %v12_v0 }
   0x3   :  { %14 = vsyncpa [#allocation4], 0 }
   0x4   :  { %16 = vsyncpa [#allocation4 + $0x1], 0  ;;  %s902_s26 = smov 0   ;;  %s904_s27 = smov 0  }
   0x5   :  { %s906_s28 = smov 0   ;;  %s908_s29 = smov 0  }
   0x6   :  { %s910_s30 = smov 0   ;;  %s912_s8 = smov 0  }
   0x7 LB: > { %s683_s6 = sadd.s32 4294967295, %s854_s8   ;;  %s684_s9 = sadd.s32 4294967294, %s854_s8   ;;  %s854_s8 = sphi %s912_s8, %s22_s8   ;;  %s850_s30 = sphi %s910_s30, %s1036_s30   ;;  %s846_s29 = sphi %s908_s29, %s1035_s29   ;;  %s842_s28 = sphi %s906_s28, %s1034_s28   ;;  %s838_s27 = sphi %s904_s27, %s1033_s27   ;;  %s834_s26 = sphi %s902_s26, %s1032_s26  }
   0x8   : > { %s31_s10 = sadd.s32 1, %s850_s30  ;;  %s204_s11 = sadd.s32 1, %s842_s28 }
   0x9   : > { %p32_p0 = scmp.ge.s32.totalorder %s31_s10, 2  ;;  %p214_p1 = scmp.ne.s32.totalorder %s842_s28, %s838_s27 }
   0xa   : > { %p215_p2 = scmp.eq.s32.totalorder %s683_s6, 1  ;;  %p220_p3 = scmp.ne.s32.totalorder %s838_s27, %s834_s26 }
   0xb   : > { %s1038_s10 = smov (%p32_p0, %s31_s10), 0  ;;  %p221_p5 = scmp.eq.s32.totalorder %s684_s9, 1 }
   0xc   : > { %p942_p4 = por %p215_p2, %p214_p1  ;;  %s199_s13 = ssub.s32 %s850_s30, %s1038_s10 }
   0xd   : > { %p687_p6 = scmp.ge.s32.totalorder %s854_s8, 1  ;;  %p202_p7 = scmp.eq.s32.totalorder %s199_s13, 0 }
   0xe   : > { %p949_p8 = por %p221_p5, %p220_p3  ;;  %p280_p9 = scmp.lt.s32.totalorder %s854_s8, 3 }
   0xf   : > { %s955_s15 = scalar_select %p202_p7, %s842_s28, %s204_s11  }
  0x10   : > { %p281_p10 = pnand %p687_p6, %p280_p9 }
  0x11   : > { %p326_p11 = scmp.lt.s32.totalorder (!%p281_p10), %s846_s29, 1  ;;  %s708_s20 = sshll.u32 (!%p281_p10), %s846_s29, 7 }
  0x12   : > { %284 = sbr.rel (%p281_p10) target bundleno = 299 (0x12b), region = 48  ;;  %s587_s25 = scalar_lea.hbm (!%p281_p10), %s1029_s7, %s708_s20 }
  0x13   : > { %s858_s11 = smov (!%p281_p10), [#allocation3]  }
  0x14   : > { %s782_s13 = sshll.u32 (!%p281_p10), %s858_s11, 4  ;;  %s783_s13 = int_to_ptr.vmem [resolvable:$false] %s782_s13 }
  0x17   : > { %v856_v1 = vmov 0.0   ;;  %v512_v2 = vld [vmem:[%s1026_s4] sm:$0xff]  ;;  %s327_s18 = scalar_select %p326_p11, %s846_s29, 1  ;;  %v857_v4 = vmov 0   ;;  %vm356_vm0 = vcmask 1043456   ;;  %vm352_vm1 = vcmask 31744  }
  0x18   : > { %425 = vmatprep.mubr.f32.mxu0 %v856_v1  ;;  %505 = vmatprep.mubr.f32.mxu1 %v856_v1  ;;  %v542_v3 = vld [vmem:[#allocation2] sm:$0x1]  ;;  %v548_v22 = vlaneseq  ;;  %s784_s29 = scalar_lea.vmem %s783_s13, 256 }
  0x19   : > { %766 = vset.pattern.permute.xlu0 %v857_v4  ;;  %767 = vset.pattern.permute.xlu1 %v857_v4  ;;  %s706_s19 = sshll.u32 %s327_s18, 3  ;;  %v522_v5 = vld [vmem:[%s1027_s5] sm:$0xff]  ;;  %s322_s18 = sand.u32 1, %s838_s27  }
  0x1a   : > { %515 = vperm.xlu0 %766, %v512_v2   ;;  %545 = vperm.xlu1 %767, %v542_v3   ;;  %s343_s24 = scalar_lea.vmem %s1023_s1, %s706_s19  ;;  %s333_s9 = scalar_lea.vmem %s1022_s0, %s706_s19  ;;  %v349_v10 = vld [vmem:[%s1025_s3] sm:$0xff]  ;;  %v549_v28 = vshrl.u32 %v548_v22, 7 }
  0x1b   : > { %v971_v6 = vld [vmem:[%s343_s24] sm:$0xff]  ;;  %s688_s19 = sshll.u32 %s322_s18, 3  ;;  %s573_s6 = scalar_lea.sflag [#allocation4], %s322_s18 }
  0x1c   : > { %v346_v7 = vld [vmem:[%s333_s9] sm:$0xff]  ;;  %v351_v8 = vcombine.high %v971_v6, %v971_v6  ;;  %v550_v33 = vsub.s32 0, %v549_v28  ;;  %s324_s21 = scalar_lea.vmem [#allocation3], %s688_s19 }
  0x1d   : > { %v433_v9 = vcombine.high %v346_v7, %v346_v7  ;;  %v348_v11 = vld [vmem:[%s1024_s2] sm:$0xff]  ;;  %s589_s22 = sshll.u32 %s324_s21, 4  ;;  %s590_s22 = int_to_ptr.vmem [resolvable:$true] %s589_s22 }
  0x1e   : > { %525 = vperm.xlu0 %766, %v522_v5   ;;  %693 = vmatprep.subr.msk.mxu0 %vm356_vm0, %v351_v8  ;;  %s778_s9 = scalar_lea.vmem %s590_s22, 128  ;;  %p785_p1 = scmp.lt.s32.totalorder %s590_s22, %s783_s13 }
  0x1f   : > { %696 = vmatprep.subr.msk.mxu1 %vm356_vm0, %v433_v9  ;;  %694 = vmatpush1.msk.msra.mxu0 %vm356_vm0, %v971_v6  ;;  %p779_p12 = scmp.ne.s32.totalorder %s590_s22, %s778_s9  ;;  %p786_p2 = scmp.lt.s32.totalorder %s784_s29, %s778_s9 }
  0x20   : > { %697 = vmatpush1.msk.msra.mxu1 %vm356_vm0, %v346_v7  ;;  %695 = vmatmul.mubr.msk.f32.vlgmr.msra.gmra.mxu0 %vm352_vm1, %v349_v10 }
  0x21   : > { %698 = vmatmul.mubr.msk.f32.vlgmr.msra.gmra.mxu1 %vm352_vm1, %v348_v11  ;;  %p780_p13 = pnand %p779_p12, %p942_p4  ;;  %p787_p3 = por %p786_p2, %p785_p1 }
  0x23   : > { %p781_p0 = pneg %p780_p13 }
  0x25   : > { %p788_p5 = pnand %p787_p3, %p781_p0 }
  0x95   : > { %v516_v12 = vpop.permute.xlu0 %515  ;;  %v546_v34 = vpop.permute.xlu1 %545 }
  0x96   : > { %v551_v39 = vrot.slane %v546_v34, %v550_v33 }
  0x99   : > { %v526_v23 = vpop.permute.xlu0 %525 }
  0xe0   : > { %v427_v13 = vpop.f32.mrf.mxu0 }
  0xe1   : > { %v507_v14 = vpop.f32.mrf.mxu1 }
  0xe2   : > { %v508_v15 = vadd.f32 %v507_v14, %v427_v13  ;;  %v429_v16 = vpop.f32.mrf.mxu0 }
  0xe3   : > { %v509_v17 = vpop.f32.mrf.mxu1 }
  0xe4   : > { %v518_v18 = vadd.f32 %v516_v12, %v508_v15  ;;  %v510_v19 = vadd.f32 %v509_v17, %v429_v16 }
  0xe6   : > { %v519_v20 = vadd.f32 %v516_v12, %v510_v19  ;;  %v520_v21 = vmax.f32 %v518_v18, 0.0 }
  0xe8   : > { %v521_v24 = vmax.f32 %v519_v20, 0.0  ;;  %v528_v25 = vmul.f32 %v526_v23, %v520_v21 }
  0xea   : > { %v529_v26 = vmul.f32 %v526_v23, %v521_v24  ;;  %v530_v27 = vrot.slane %v528_v25, 4 }
  0xec   : > { %v531_v29 = vadd.f32 %v530_v27, %v528_v25  ;;  %v536_v30 = vrot.slane %v529_v26, 4 }
  0xee   : > { %v532_v31 = vrot.slane %v531_v29, 2  ;;  %v537_v32 = vadd.f32 %v536_v30, %v529_v26 }
  0xf0   : > { %v533_v35 = vadd.f32 %v532_v31, %v531_v29  ;;  %v538_v36 = vrot.slane %v537_v32, 2 }
  0xf2   : > { %v539_v37 = vadd.f32 %v538_v36, %v537_v32  ;;  %v534_v38 = vrot.slane %v533_v35, 1 }
  0xf4   : > { %v535_v40 = vadd.f32 %v534_v38, %v533_v35  ;;  %v540_v41 = vrot.slane %v539_v37, 1 }
  0xf6   : > { %v541_v42 = vadd.f32 %v540_v41, %v539_v37  ;;  %v552_v43 = vadd.f32 %v551_v39, %v535_v40 }
  0xf8   : > { %v553_v44 = vadd.f32 %v551_v39, %v541_v42  ;;  %v699_v45 = vmul.f32 -1.442695, %v552_v43 }
  0xfa   : > { %770 = vpow2.f32 %v699_v45  ;;  %v700_v46 = vmul.f32 -1.442695, %v553_v44 }
  0xfc   : > { %772 = vpow2.f32 %v700_v46 }
 0x107   : > { %v771_v47 = vpop.eup %770 }
 0x108   : > { %v560_v48 = vadd.f32 1.0, %v771_v47 }
 0x109   : > { %v773_v49 = vpop.eup %772 }
 0x10a   : > { %v561_v50 = vadd.f32 1.0, %v773_v49  ;;  %774 = vrcp.f32 %v560_v48 }
 0x10c   : > { %776 = vrcp.f32 %v561_v50 }
 0x117   : > { %v775_v51 = vpop.eup %774 }
 0x119   : > { %v777_v52 = vpop.eup %776 }
 0x11a   : > { %v568_v53 = vcombine.low %v775_v51, %v777_v52 }
 0x11c   : > { %v570_v54 = vmul.f32 %v568_v53, %v971_v6 }
 0x11e   : > { %571 = vst [vmem:[%s324_s21] sm:$0xff] %v570_v54 }
 0x11f   : > { %791 = shalt.err (!%p788_p5)
}
 0x120   : > { %s792_s16 = scalar_lea.hbm %s587_s25, 128  ;;  %s796_s19 = scalar_lea.hbm %s1029_s7, 256 }
 0x121   : > { %p793_p6 = scmp.ne.s32.totalorder %s587_s25, %s792_s16  ;;  %p797_p10 = scmp.lt.s32.totalorder %s587_s25, %s1029_s7 }
 0x122   : > { %p798_p11 = scmp.lt.s32.totalorder %s796_s19, %s792_s16 }
 0x123   : > { %p794_p7 = pnand %p793_p6, %p942_p4 }
 0x124   : > { %p799_p12 = por %p798_p11, %p797_p10 }
 0x125   : > { %p795_p9 = pneg %p794_p7 }
 0x127   : > { %p800_p13 = pnand %p799_p12, %p795_p9 }
 0x129   : > { %803 = shalt.err (!%p800_p13)
}
 0x12a   : > { %709 = dma.vmem_to_hbm [thread:$0]  (%p942_p4), %s590_s22, 128, %s587_s25, %s573_s6  }
 0x12b PF: > { %p715_p0 = scmp.ge.s32.totalorder %s854_s8, 2  ;;  %s601_s23 = sand.u32 1, %s834_s26  }
 0x12c   : > { %s602_s24 = scalar_lea.sflag [#allocation4], %s601_s23 }
 0x12d   : > { %p712_p1 = pnand %p715_p0, %p949_p8 }
 0x12f   : > { %p713_p2 = pneg %p712_p1 }
 0x131   : > { %829 = dma.done.wait (%p713_p2), %s602_s24, 128  }
 0x132   : > { %831 = vsyncadd (%p713_p2), %s602_s24, 4294967168  ;;  %s22_s8 = sadd.s32 1, %s854_s8   ;;  %s1032_s26 = smov %s838_s27 }
 0x133   : > { %p19_p3 = scmp.ge.s32.totalorder %s22_s8, 4   ;;  %s1033_s27 = smov %s842_s28 }
 0x134   : > { %s1034_s28 = smov %s955_s15  ;;  %s1035_s29 = smov %s850_s30 }
 0x135   : > { %s1036_s30 = smov %s1038_s10  ;;  %21 = sbr.rel (!%p19_p3) target bundleno = 7 (0x7), region = 86 }
 0x13a   :  { %607 = vsyncpa [#allocation4], 1 }
 0x13b   :  { %609 = vsyncpa [#allocation4 + $0x1], 1 }

</bundles_post_ra>
